<compile_context>
chip_gen: v7x
topology: tpu7x:2x2x1
jax: 0.10.0
libtpu: 0.0.40
codegen_flags: <defaults>
</compile_context>

<pallas_src>
import jax
import jax.numpy as jnp
from jax.experimental import pallas as pl
from jax.experimental.pallas import tpu as pltpu

# ----------------------- exp_config -----------------------
NUM_LAYERS = 2
N_FILTERS = 8
KSIZE = 3
BATCH_NORM = False   # TODO(synk): training-mode BatchNorm (batch statistics) not implemented;
                     # eval-mode BN would fold into per-channel scale/shift of the conv weights.
ACTIVATION = "relu"  # TODO(synk): 'rbf' draws torch.randn at forward time (non-deterministic) -> not translated.


# ----------------------- fused kernel -----------------------
def make_fused_normalizer_kernel(layer_dims, K, W_img, N):
    """layer_dims: static tuple of (Cin, Cout, apply_relu) per conv layer.

    Kernel refs: x_ref (Cin0, N), mask_ref (K*K, N),
                 then (w_ref, b_ref) per layer, then out_ref (Cin0, N).
    """
    pad = (K - 1) // 2

    def conv_layer(h, masks, w_mat, b_col, cin, cout, apply_relu):
        # h: (cin, N)  lane-dense activation (batch folded into lanes)
        # Build the im2col patch matrix with 9 lane-rolls + edge masks.
        rows = []
        for kh in range(K):
            for kw in range(K):
                d = (kh - pad) * W_img + (kw - pad)      # flat tap offset (static)
                shift = (-d) % N                          # jnp.roll(h, -d) semantics
                shifted = pltpu.roll(h, shift, axis=1) if shift else h
                t = kh * K + kw
                rows.append(shifted * masks[t:t + 1, :])  # zero out-of-image taps
        kdim = cin * K * K
        kpad = (-kdim) % 8                                # align contraction to sublane tile
        if kpad:
            rows.append(jnp.zeros((kpad, N), jnp.float32))
        patches = jnp.concatenate(rows, axis=0)           # (round8(cin*K*K), N)

        # One MXU matmul per conv layer; weights already padded to match.
        y = jnp.dot(w_mat, patches, preferred_element_type=jnp.float32)
        y = y + b_col                                      # (round8(cout), 1) broadcast
        if apply_relu:
            y = jnp.maximum(y, 0.0)
        return y[:cout]                                    # drop Cout padding rows

    def kernel(*refs):
        x_ref, m_ref = refs[0], refs[1]
        out_ref = refs[-1]
        wb_refs = refs[2:-1]

        x = x_ref[...]                                     # (Cin0, N)
        masks = m_ref[...]                                 # (K*K, N)

        h = x
        for li, (cin, cout, apply_relu) in enumerate(layer_dims):
            w_mat = wb_refs[2 * li][...]
            b_col = wb_refs[2 * li + 1][...]
            h = conv_layer(h, masks, w_mat, b_col, cin, cout, apply_relu)

        # last layer is the 1-channel delta conv -> residual add
        out_ref[...] = x + h

    return kernel


# ----------------------- wrapper glue -----------------------
def _make_tap_masks(B, H, W, K):
    """(K*K, B*H*W) validity masks for the 9 conv taps on the flattened layout."""
    pad = (K - 1) // 2
    p = jnp.arange(B * H * W)
    hh = (p % (H * W)) // W
    ww = p % W
    masks = []
    for kh in range(K):
        for kw in range(K):
            dh, dw = kh - pad, kw - pad
            valid = ((hh + dh >= 0) & (hh + dh < H) &
                     (ww + dw >= 0) & (ww + dw < W))
            masks.append(valid)
    return jnp.stack(masks).astype(jnp.float32)


def _prep_wb(w, b):
    """(Cout, Cin, K, K) -> (round8(Cout), round8(Cin*K*K)) matmul weights + bias column.

    Column order is (kh, kw)-major, ci-minor, matching the in-kernel patch matrix.
    """
    Cout, Cin, K, _ = w.shape
    kdim = Cin * K * K
    kpad = (-kdim) % 8
    cpad = (-Cout) % 8
    w_mat = jnp.transpose(w, (0, 2, 3, 1)).reshape(Cout, kdim)
    w_mat = jnp.pad(w_mat, ((0, cpad), (0, kpad))).astype(jnp.float32)
    b_col = jnp.pad(b.reshape(Cout, 1), ((0, cpad), (0, 0))).astype(jnp.float32)
    return w_mat, b_col


def normalizer_forward(params, x):
    """Fused Pallas forward pass:  x + delta_conv(relu(conv(relu(conv(x)))))."""
    B, Cin, H, W = x.shape
    N = B * H * W                                        # 512 here: multiple of 128 (lane-dense)
    # fold batch onto lanes: (B, C, H, W) -> (C, B*H*W)
    x_flat = jnp.transpose(x, (1, 0, 2, 3)).reshape(Cin, N).astype(jnp.float32)
    masks = _make_tap_masks(B, H, W, KSIZE)

    layer_dims = []
    wb_args = []
    n0 = Cin
    for (w, b) in params["conv"]:
        wb_args += list(_prep_wb(w, b))
        layer_dims.append((n0, w.shape[0], ACTIVATION == "relu"))
        n0 = w.shape[0]
    wd, bd = params["delta"]
    wb_args += list(_prep_wb(wd, bd))
    layer_dims.append((n0, wd.shape[0], False))

    kernel = make_fused_normalizer_kernel(tuple(layer_dims), KSIZE, W, N)
    vmem = pl.BlockSpec(memory_space=pltpu.MemorySpace.VMEM)
    out_flat = pl.pallas_call(
        kernel,
        out_shape=jax.ShapeDtypeStruct((Cin, N), jnp.float32),
        in_specs=[vmem] * (2 + len(wb_args)),
        out_specs=vmem,
    )(x_flat, masks, *wb_args)

    return jnp.transpose(out_flat.reshape(Cin, B, H, W), (1, 0, 2, 3))


# ----------------------- params -----------------------
def init_params(key):
    """Deterministic parameter init matching the module's __init__ shapes."""
    params = {"conv": [], "delta": None}
    n0 = 1
    for _ in range(NUM_LAYERS):
        key, kw, kb = jax.random.split(key, 3)
        w = jax.random.normal(kw, (N_FILTERS, n0, KSIZE, KSIZE), jnp.float32) * 0.1
        b = jax.random.normal(kb, (N_FILTERS,), jnp.float32) * 0.1
        params["conv"].append((w, b))
        n0 = N_FILTERS
    key, kw, kb = jax.random.split(key, 3)
    wd = jax.random.normal(kw, (1, N_FILTERS, KSIZE, KSIZE), jnp.float32) * 0.1
    bd = jax.random.normal(kb, (1,), jnp.float32) * 0.1
    params["delta"] = (wd, bd)
    return params


# --------------------- pure-JAX reference ---------------------
def _conv_ref(x, w, b):
    p = (KSIZE - 1) // 2
    y = jax.lax.conv_general_dilated(
        x, w, window_strides=(1, 1), padding=((p, p), (p, p)),
        dimension_numbers=("NCHW", "OIHW", "NCHW"))
    return y + b[None, :, None, None]


def normalizer_ref(params, x):
    out = x
    for (w, b) in params["conv"]:
        out = _conv_ref(out, w, b)
        if ACTIVATION == "relu":
            out = jnp.maximum(out, 0.0)
    wd, bd = params["delta"]
    out = _conv_ref(out, wd, bd)
    return x + out


if __name__ == "__main__":
    key = jax.random.PRNGKey(0)
    key, kx = jax.random.split(key)
    B, C, H, W = 2, 1, 16, 16          # Normalizer's first conv has in_channels = 1
    x = jax.random.normal(kx, (B, C, H, W), jnp.float32)

    params = init_params(key)

    fwd = jax.jit(normalizer_forward)
    out = jax.block_until_ready(fwd(params, x))

    ref = jax.block_until_ready(normalizer_ref(params, x))
    assert out.shape == (B, 1, H, W)
    # MXU matmul vs XLA conv: allow small accumulation-order / precision deltas.
    assert jnp.allclose(out, ref, atol=5e-3, rtol=5e-3), "Pallas output mismatch vs reference"

    print("KERNEL_OK")
</pallas_src>

<mosaic_0001>
module attributes {stable_mosaic.version = 11 : i64} {
  func.func @kernel(%arg0: memref<1x512xf32, #tpu.memory_space<vmem>>, %arg1: memref<9x512xf32, #tpu.memory_space<vmem>>, %arg2: memref<8x16xf32, #tpu.memory_space<vmem>>, %arg3: memref<8x1xf32, #tpu.memory_space<vmem>>, %arg4: memref<8x72xf32, #tpu.memory_space<vmem>>, %arg5: memref<8x1xf32, #tpu.memory_space<vmem>>, %arg6: memref<8x72xf32, #tpu.memory_space<vmem>>, %arg7: memref<8x1xf32, #tpu.memory_space<vmem>>, %arg8: memref<1x512xf32, #tpu.memory_space<vmem>>) attributes {dimension_semantics = [], scalar_prefetch = 0 : i64, scratch_operands = 0 : i64, tpu.core_type = #tpu.core_type<tc>} {
    %c0 = arith.constant 0 : index
    %c0_0 = arith.constant 0 : index
    %0 = vector.load %arg0[%c0, %c0_0] : memref<1x512xf32, #tpu.memory_space<vmem>>, vector<1x512xf32>
    %c0_1 = arith.constant 0 : index
    %c0_2 = arith.constant 0 : index
    %1 = vector.load %arg1[%c0_1, %c0_2] : memref<9x512xf32, #tpu.memory_space<vmem>>, vector<9x512xf32>
    %c0_3 = arith.constant 0 : index
    %c0_4 = arith.constant 0 : index
    %2 = vector.load %arg2[%c0_3, %c0_4] : memref<8x16xf32, #tpu.memory_space<vmem>>, vector<8x16xf32>
    %c0_5 = arith.constant 0 : index
    %c0_6 = arith.constant 0 : index
    %3 = vector.load %arg3[%c0_5, %c0_6] : memref<8x1xf32, #tpu.memory_space<vmem>>, vector<8x1xf32>
    %c17_i32 = arith.constant 17 : i32
    %4 = tpu.dynamic_rotate %0 by %c17_i32 dim 1 : vector<1x512xf32>, i32 -> vector<1x512xf32>
    %5 = vector.extract_strided_slice %1 {offsets = [0, 0], sizes = [1, 512], strides = [1, 1]} : vector<9x512xf32> to vector<1x512xf32>
    %6 = arith.mulf %4, %5 : vector<1x512xf32>
    %c16_i32 = arith.constant 16 : i32
    %7 = tpu.dynamic_rotate %0 by %c16_i32 dim 1 : vector<1x512xf32>, i32 -> vector<1x512xf32>
    %8 = vector.extract_strided_slice %1 {offsets = [1, 0], sizes = [1, 512], strides = [1, 1]} : vector<9x512xf32> to vector<1x512xf32>
    %9 = arith.mulf %7, %8 : vector<1x512xf32>
    %c15_i32 = arith.constant 15 : i32
    %10 = tpu.dynamic_rotate %0 by %c15_i32 dim 1 : vector<1x512xf32>, i32 -> vector<1x512xf32>
    %11 = vector.extract_strided_slice %1 {offsets = [2, 0], sizes = [1, 512], strides = [1, 1]} : vector<9x512xf32> to vector<1x512xf32>
    %12 = arith.mulf %10, %11 : vector<1x512xf32>
    %c1_i32 = arith.constant 1 : i32
    %13 = tpu.dynamic_rotate %0 by %c1_i32 dim 1 : vector<1x512xf32>, i32 -> vector<1x512xf32>
    %14 = vector.extract_strided_slice %1 {offsets = [3, 0], sizes = [1, 512], strides = [1, 1]} : vector<9x512xf32> to vector<1x512xf32>
    %15 = arith.mulf %13, %14 : vector<1x512xf32>
    %16 = vector.extract_strided_slice %1 {offsets = [4, 0], sizes = [1, 512], strides = [1, 1]} : vector<9x512xf32> to vector<1x512xf32>
    %17 = arith.mulf %0, %16 : vector<1x512xf32>
    %c511_i32 = arith.constant 511 : i32
    %18 = tpu.dynamic_rotate %0 by %c511_i32 dim 1 : vector<1x512xf32>, i32 -> vector<1x512xf32>
    %19 = vector.extract_strided_slice %1 {offsets = [5, 0], sizes = [1, 512], strides = [1, 1]} : vector<9x512xf32> to vector<1x512xf32>
    %20 = arith.mulf %18, %19 : vector<1x512xf32>
    %c497_i32 = arith.constant 497 : i32
    %21 = tpu.dynamic_rotate %0 by %c497_i32 dim 1 : vector<1x512xf32>, i32 -> vector<1x512xf32>
    %22 = vector.extract_strided_slice %1 {offsets = [6, 0], sizes = [1, 512], strides = [1, 1]} : vector<9x512xf32> to vector<1x512xf32>
    %23 = arith.mulf %21, %22 : vector<1x512xf32>
    %c496_i32 = arith.constant 496 : i32
    %24 = tpu.dynamic_rotate %0 by %c496_i32 dim 1 : vector<1x512xf32>, i32 -> vector<1x512xf32>
    %25 = vector.extract_strided_slice %1 {offsets = [7, 0], sizes = [1, 512], strides = [1, 1]} : vector<9x512xf32> to vector<1x512xf32>
    %26 = arith.mulf %24, %25 : vector<1x512xf32>
    %c495_i32 = arith.constant 495 : i32
    %27 = tpu.dynamic_rotate %0 by %c495_i32 dim 1 : vector<1x512xf32>, i32 -> vector<1x512xf32>
    %28 = vector.extract_strided_slice %1 {offsets = [8, 0], sizes = [1, 512], strides = [1, 1]} : vector<9x512xf32> to vector<1x512xf32>
    %29 = arith.mulf %27, %28 : vector<1x512xf32>
    %cst = arith.constant 0.000000e+00 : f32
    %30 = vector.broadcast %cst : f32 to vector<7x512xf32>
    %31 = tpu.concatenate %6, %9, %12, %15, %17, %20, %23, %26, %29, %30 in 0 : vector<1x512xf32>, vector<1x512xf32>, vector<1x512xf32>, vector<1x512xf32>, vector<1x512xf32>, vector<1x512xf32>, vector<1x512xf32>, vector<1x512xf32>, vector<1x512xf32>, vector<7x512xf32> -> vector<16x512xf32>
    %cst_7 = arith.constant dense<0.000000e+00> : vector<8x512xf32>
    %32 = tpu.matmul %2, %31, %cst_7 {dimension_numbers = #tpu.dot_dimension_numbers<[1], [0], [0], [1], [0, 0, 1, 1], [], []>} : vector<8x16xf32>, vector<16x512xf32>, vector<8x512xf32> -> vector<8x512xf32>
    %33 = vector.broadcast %3 : vector<8x1xf32> to vector<8x512xf32>
    %34 = arith.addf %32, %33 : vector<8x512xf32>
    %cst_8 = arith.constant 0.000000e+00 : f32
    %35 = vector.broadcast %cst_8 : f32 to vector<8x512xf32>
    %36 = arith.maximumf %34, %35 : vector<8x512xf32>
    %c0_9 = arith.constant 0 : index
    %c0_10 = arith.constant 0 : index
    %37 = vector.load %arg4[%c0_9, %c0_10] : memref<8x72xf32, #tpu.memory_space<vmem>>, vector<8x72xf32>
    %c0_11 = arith.constant 0 : index
    %c0_12 = arith.constant 0 : index
    %38 = vector.load %arg5[%c0_11, %c0_12] : memref<8x1xf32, #tpu.memory_space<vmem>>, vector<8x1xf32>
    %c17_i32_13 = arith.constant 17 : i32
    %39 = tpu.dynamic_rotate %36 by %c17_i32_13 dim 1 : vector<8x512xf32>, i32 -> vector<8x512xf32>
    %40 = vector.extract_strided_slice %1 {offsets = [0, 0], sizes = [1, 512], strides = [1, 1]} : vector<9x512xf32> to vector<1x512xf32>
    %41 = vector.broadcast %40 : vector<1x512xf32> to vector<8x512xf32>
    %42 = arith.mulf %39, %41 : vector<8x512xf32>
    %c16_i32_14 = arith.constant 16 : i32
    %43 = tpu.dynamic_rotate %36 by %c16_i32_14 dim 1 : vector<8x512xf32>, i32 -> vector<8x512xf32>
    %44 = vector.extract_strided_slice %1 {offsets = [1, 0], sizes = [1, 512], strides = [1, 1]} : vector<9x512xf32> to vector<1x512xf32>
    %45 = vector.broadcast %44 : vector<1x512xf32> to vector<8x512xf32>
    %46 = arith.mulf %43, %45 : vector<8x512xf32>
    %c15_i32_15 = arith.constant 15 : i32
    %47 = tpu.dynamic_rotate %36 by %c15_i32_15 dim 1 : vector<8x512xf32>, i32 -> vector<8x512xf32>
    %48 = vector.extract_strided_slice %1 {offsets = [2, 0], sizes = [1, 512], strides = [1, 1]} : vector<9x512xf32> to vector<1x512xf32>
    %49 = vector.broadcast %48 : vector<1x512xf32> to vector<8x512xf32>
    %50 = arith.mulf %47, %49 : vector<8x512xf32>
    %c1_i32_16 = arith.constant 1 : i32
    %51 = tpu.dynamic_rotate %36 by %c1_i32_16 dim 1 : vector<8x512xf32>, i32 -> vector<8x512xf32>
    %52 = vector.extract_strided_slice %1 {offsets = [3, 0], sizes = [1, 512], strides = [1, 1]} : vector<9x512xf32> to vector<1x512xf32>
    %53 = vector.broadcast %52 : vector<1x512xf32> to vector<8x512xf32>
    %54 = arith.mulf %51, %53 : vector<8x512xf32>
    %55 = vector.extract_strided_slice %1 {offsets = [4, 0], sizes = [1, 512], strides = [1, 1]} : vector<9x512xf32> to vector<1x512xf32>
    %56 = vector.broadcast %55 : vector<1x512xf32> to vector<8x512xf32>
    %57 = arith.mulf %36, %56 : vector<8x512xf32>
    %c511_i32_17 = arith.constant 511 : i32
    %58 = tpu.dynamic_rotate %36 by %c511_i32_17 dim 1 : vector<8x512xf32>, i32 -> vector<8x512xf32>
    %59 = vector.extract_strided_slice %1 {offsets = [5, 0], sizes = [1, 512], strides = [1, 1]} : vector<9x512xf32> to vector<1x512xf32>
    %60 = vector.broadcast %59 : vector<1x512xf32> to vector<8x512xf32>
    %61 = arith.mulf %58, %60 : vector<8x512xf32>
    %c497_i32_18 = arith.constant 497 : i32
    %62 = tpu.dynamic_rotate %36 by %c497_i32_18 dim 1 : vector<8x512xf32>, i32 -> vector<8x512xf32>
    %63 = vector.extract_strided_slice %1 {offsets = [6, 0], sizes = [1, 512], strides = [1, 1]} : vector<9x512xf32> to vector<1x512xf32>
    %64 = vector.broadcast %63 : vector<1x512xf32> to vector<8x512xf32>
    %65 = arith.mulf %62, %64 : vector<8x512xf32>
    %c496_i32_19 = arith.constant 496 : i32
    %66 = tpu.dynamic_rotate %36 by %c496_i32_19 dim 1 : vector<8x512xf32>, i32 -> vector<8x512xf32>
    %67 = vector.extract_strided_slice %1 {offsets = [7, 0], sizes = [1, 512], strides = [1, 1]} : vector<9x512xf32> to vector<1x512xf32>
    %68 = vector.broadcast %67 : vector<1x512xf32> to vector<8x512xf32>
    %69 = arith.mulf %66, %68 : vector<8x512xf32>
    %c495_i32_20 = arith.constant 495 : i32
    %70 = tpu.dynamic_rotate %36 by %c495_i32_20 dim 1 : vector<8x512xf32>, i32 -> vector<8x512xf32>
    %71 = vector.extract_strided_slice %1 {offsets = [8, 0], sizes = [1, 512], strides = [1, 1]} : vector<9x512xf32> to vector<1x512xf32>
    %72 = vector.broadcast %71 : vector<1x512xf32> to vector<8x512xf32>
    %73 = arith.mulf %70, %72 : vector<8x512xf32>
    %74 = tpu.concatenate %42, %46, %50, %54, %57, %61, %65, %69, %73 in 0 : vector<8x512xf32>, vector<8x512xf32>, vector<8x512xf32>, vector<8x512xf32>, vector<8x512xf32>, vector<8x512xf32>, vector<8x512xf32>, vector<8x512xf32>, vector<8x512xf32> -> vector<72x512xf32>
    %cst_21 = arith.constant dense<0.000000e+00> : vector<8x512xf32>
    %75 = tpu.matmul %37, %74, %cst_21 {dimension_numbers = #tpu.dot_dimension_numbers<[1], [0], [0], [1], [0, 0, 1, 1], [], []>} : vector<8x72xf32>, vector<72x512xf32>, vector<8x512xf32> -> vector<8x512xf32>
    %76 = vector.broadcast %38 : vector<8x1xf32> to vector<8x512xf32>
    %77 = arith.addf %75, %76 : vector<8x512xf32>
    %cst_22 = arith.constant 0.000000e+00 : f32
    %78 = vector.broadcast %cst_22 : f32 to vector<8x512xf32>
    %79 = arith.maximumf %77, %78 : vector<8x512xf32>
    %c0_23 = arith.constant 0 : index
    %c0_24 = arith.constant 0 : index
    %80 = vector.load %arg6[%c0_23, %c0_24] : memref<8x72xf32, #tpu.memory_space<vmem>>, vector<8x72xf32>
    %c0_25 = arith.constant 0 : index
    %c0_26 = arith.constant 0 : index
    %81 = vector.load %arg7[%c0_25, %c0_26] : memref<8x1xf32, #tpu.memory_space<vmem>>, vector<8x1xf32>
    %c17_i32_27 = arith.constant 17 : i32
    %82 = tpu.dynamic_rotate %79 by %c17_i32_27 dim 1 : vector<8x512xf32>, i32 -> vector<8x512xf32>
    %83 = vector.extract_strided_slice %1 {offsets = [0, 0], sizes = [1, 512], strides = [1, 1]} : vector<9x512xf32> to vector<1x512xf32>
    %84 = vector.broadcast %83 : vector<1x512xf32> to vector<8x512xf32>
    %85 = arith.mulf %82, %84 : vector<8x512xf32>
    %c16_i32_28 = arith.constant 16 : i32
    %86 = tpu.dynamic_rotate %79 by %c16_i32_28 dim 1 : vector<8x512xf32>, i32 -> vector<8x512xf32>
    %87 = vector.extract_strided_slice %1 {offsets = [1, 0], sizes = [1, 512], strides = [1, 1]} : vector<9x512xf32> to vector<1x512xf32>
    %88 = vector.broadcast %87 : vector<1x512xf32> to vector<8x512xf32>
    %89 = arith.mulf %86, %88 : vector<8x512xf32>
    %c15_i32_29 = arith.constant 15 : i32
    %90 = tpu.dynamic_rotate %79 by %c15_i32_29 dim 1 : vector<8x512xf32>, i32 -> vector<8x512xf32>
    %91 = vector.extract_strided_slice %1 {offsets = [2, 0], sizes = [1, 512], strides = [1, 1]} : vector<9x512xf32> to vector<1x512xf32>
    %92 = vector.broadcast %91 : vector<1x512xf32> to vector<8x512xf32>
    %93 = arith.mulf %90, %92 : vector<8x512xf32>
    %c1_i32_30 = arith.constant 1 : i32
    %94 = tpu.dynamic_rotate %79 by %c1_i32_30 dim 1 : vector<8x512xf32>, i32 -> vector<8x512xf32>
    %95 = vector.extract_strided_slice %1 {offsets = [3, 0], sizes = [1, 512], strides = [1, 1]} : vector<9x512xf32> to vector<1x512xf32>
    %96 = vector.broadcast %95 : vector<1x512xf32> to vector<8x512xf32>
    %97 = arith.mulf %94, %96 : vector<8x512xf32>
    %98 = vector.extract_strided_slice %1 {offsets = [4, 0], sizes = [1, 512], strides = [1, 1]} : vector<9x512xf32> to vector<1x512xf32>
    %99 = vector.broadcast %98 : vector<1x512xf32> to vector<8x512xf32>
    %100 = arith.mulf %79, %99 : vector<8x512xf32>
    %c511_i32_31 = arith.constant 511 : i32
    %101 = tpu.dynamic_rotate %79 by %c511_i32_31 dim 1 : vector<8x512xf32>, i32 -> vector<8x512xf32>
    %102 = vector.extract_strided_slice %1 {offsets = [5, 0], sizes = [1, 512], strides = [1, 1]} : vector<9x512xf32> to vector<1x512xf32>
    %103 = vector.broadcast %102 : vector<1x512xf32> to vector<8x512xf32>
    %104 = arith.mulf %101, %103 : vector<8x512xf32>
    %c497_i32_32 = arith.constant 497 : i32
    %105 = tpu.dynamic_rotate %79 by %c497_i32_32 dim 1 : vector<8x512xf32>, i32 -> vector<8x512xf32>
    %106 = vector.extract_strided_slice %1 {offsets = [6, 0], sizes = [1, 512], strides = [1, 1]} : vector<9x512xf32> to vector<1x512xf32>
    %107 = vector.broadcast %106 : vector<1x512xf32> to vector<8x512xf32>
    %108 = arith.mulf %105, %107 : vector<8x512xf32>
    %c496_i32_33 = arith.constant 496 : i32
    %109 = tpu.dynamic_rotate %79 by %c496_i32_33 dim 1 : vector<8x512xf32>, i32 -> vector<8x512xf32>
    %110 = vector.extract_strided_slice %1 {offsets = [7, 0], sizes = [1, 512], strides = [1, 1]} : vector<9x512xf32> to vector<1x512xf32>
    %111 = vector.broadcast %110 : vector<1x512xf32> to vector<8x512xf32>
    %112 = arith.mulf %109, %111 : vector<8x512xf32>
    %c495_i32_34 = arith.constant 495 : i32
    %113 = tpu.dynamic_rotate %79 by %c495_i32_34 dim 1 : vector<8x512xf32>, i32 -> vector<8x512xf32>
    %114 = vector.extract_strided_slice %1 {offsets = [8, 0], sizes = [1, 512], strides = [1, 1]} : vector<9x512xf32> to vector<1x512xf32>
    %115 = vector.broadcast %114 : vector<1x512xf32> to vector<8x512xf32>
    %116 = arith.mulf %113, %115 : vector<8x512xf32>
    %117 = tpu.concatenate %85, %89, %93, %97, %100, %104, %108, %112, %116 in 0 : vector<8x512xf32>, vector<8x512xf32>, vector<8x512xf32>, vector<8x512xf32>, vector<8x512xf32>, vector<8x512xf32>, vector<8x512xf32>, vector<8x512xf32>, vector<8x512xf32> -> vector<72x512xf32>
    %cst_35 = arith.constant dense<0.000000e+00> : vector<8x512xf32>
    %118 = tpu.matmul %80, %117, %cst_35 {dimension_numbers = #tpu.dot_dimension_numbers<[1], [0], [0], [1], [0, 0, 1, 1], [], []>} : vector<8x72xf32>, vector<72x512xf32>, vector<8x512xf32> -> vector<8x512xf32>
    %119 = vector.broadcast %81 : vector<8x1xf32> to vector<8x512xf32>
    %120 = arith.addf %118, %119 : vector<8x512xf32>
    %121 = vector.extract_strided_slice %120 {offsets = [0, 0], sizes = [1, 512], strides = [1, 1]} : vector<8x512xf32> to vector<1x512xf32>
    %122 = arith.addf %0, %121 : vector<1x512xf32>
    %c0_36 = arith.constant 0 : index
    %c0_37 = arith.constant 0 : index
    %123 = vector.load %arg8[%c0_36, %c0_37] : memref<1x512xf32, #tpu.memory_space<vmem>>, vector<1x512xf32>
    tpu.vector_store %arg8[%c0_36, %c0_37], %122 {strides = array<i32>} : memref<1x512xf32, #tpu.memory_space<vmem>>, vector<1x512xf32>,
    return
  }
}

</mosaic_0001>

<bundles_post_ra>
// kernel: normalizer_forward.1
= control target key start
LH: loop header
LB: loop body
LE: loop exit
PB: predicated region body
PF: predicated region fallthrough
CT: control target
= control target key end

     0   :  { %v2365_v0 = vlaneseq  ;;  %s1423_s29 = smov 16   ;;  %s1424_s30 = smov 15   ;;  %v2366_v11 = vmov 0.0   ;;  %v1432_v12 = vmov 0   ;;  %v1433_v16 = vmov 1966171168   ;;  %s2356_s0 = inlined_call_operand.vmem [shape: f32[1,512], index: 0, kind: input, shape index: {}]   ;;  %s2357_s3 = inlined_call_operand.vmem [shape: f32[8,1], index: 3, kind: input, shape index: {}]   ;;  %s2358_s1 = inlined_call_operand.vmem [shape: f32[9,512], index: 1, kind: input, shape index: {}]   ;;  %s2359_s2 = inlined_call_operand.vmem [shape: f32[8,16], index: 2, kind: input, shape index: {}]   ;;  %s2360_s5 = inlined_call_operand.vmem [shape: f32[8,1], index: 5, kind: input, shape index: {}]   ;;  %s2361_s4 = inlined_call_operand.vmem [shape: f32[8,72], index: 4, kind: input, shape index: {}]   ;;  %s2362_s7 = inlined_call_operand.vmem [shape: f32[8,1], index: 7, kind: input, shape index: {}]   ;;  %s2363_s6 = inlined_call_operand.vmem [shape: f32[8,72], index: 6, kind: input, shape index: {}]   ;;  %s2364_s8 = inlined_call_operand.vmem [shape: f32[1,512], index: 8, kind: output, shape index: {}]  }
   0x1   :  { %v1486_v2 = vld [vmem:[%s2356_s0] sm:$0xf]  ;;  %s1425_s9 = smov 17   ;;  %s1426_s10 = smov 1   ;;  %482 = vmatprep.mubr.f32.mxu0 %v2366_v11  ;;  %553 = vmatprep.mubr.f32.mxu1 %v2366_v11  ;;  %v162_v17 = vunpack.c.l.s4 %v1433_v16  ;;  %v1557_v24 = vld [vmem:[%s2358_s1 + $0x18] sm:$0xff]  ;;  %v1562_v25 = vld [vmem:[%s2358_s1 + $0x8] sm:$0xff] }
   0x2   :  { %v1481_v1 = vshrl.u32 %v2365_v0, 7  ;;  %s1427_s11 = smov 127   ;;  %s1428_s12 = smov 113   ;;  %1418 = vset.pattern.permute.xlu0 %v1432_v12  ;;  %1419 = vset.pattern.permute.xlu1 %v1432_v12  ;;  %v39_v13 = vld [vmem:[%s2357_s3] sm:$0xff]  ;;  %v1567_v26 = vld [vmem:[%s2358_s1 + $0x10] sm:$0xff]  ;;  %v1591_v39 = vand.u32 127, %v2365_v0 }
   0x3   :  { %s1429_s13 = smov 112   ;;  %s1431_s14 = smov 111   ;;  %v163_v20 = vunpack.c.0.s8 %v162_v17  ;;  %v1552_v23 = vld [vmem:[%s2358_s1] sm:$0xff]  ;;  %v160_v28 = vcombine.high %v1567_v26, %v1557_v24  ;;  %v100_v44 = vrot.slane %v1557_v24, 1  ;;  %v98_v45 = vrot.slane %v1562_v25, 1 }
   0x4   :  { %v1489_v3 = vsub.s32 2, %v1481_v1  ;;  %v1492_v4 = vsub.s32 0, %v1481_v1  ;;  %v1495_v5 = vsub.s32 3, %v1481_v1  ;;  %v1498_v6 = vsub.s32 1, %v1481_v1 }
   0x5   :  { %v159_v27 = vcombine.high %v1552_v23, %v1562_v25  ;;  %v1574_v29 = vsub.s32 %v163_v20, %v1481_v1  ;;  %v97_v43 = vrot.slane %v1552_v23, 1  ;;  %vm88_vm0 = vcmp.lt.s32.totalorder %v1591_v39, 16 }
   0x6   :  { %v52_v7 = vrot.slane %v1486_v2, %v1489_v3  ;;  %v44_v8 = vrot.slane %v1486_v2, %v1492_v4  ;;  %v56_v9 = vrot.slane %v1486_v2, %v1495_v5  ;;  %v48_v10 = vrot.slane %v1486_v2, %v1498_v6 }
   0x7   :  { %v167_v32 = vrot.slane %v159_v27, %v1574_v29  ;;  %v174_v33 = vrot.slane %v160_v28, %v1574_v29  ;;  %v99_v47 = vrot.slane %v1567_v26, 1  ;;  %vm117_vm1 = vcmp.lt.s32.totalorder %v1591_v39, 15 }
   0x8   :  { %84 = vrot.lane.b32.xlu1 %v52_v7, %s1423_s29  ;;  %80 = vrot.lane.b32.xlu0 %v44_v8, %s1423_s29  ;;  %v123_v48 = vrot.slane %v1562_v25, 2  ;;  %v122_v49 = vrot.slane %v1552_v23, 2  ;;  %v124_v52 = vrot.slane %v1567_v26, 2  ;;  %v125_v53 = vrot.slane %v1557_v24, 2 }
   0x9   :  { %v175_v36 = vcombine.low %v167_v32, %v174_v33  ;;  %vm71_vm2 = vcmp.lt.s32.totalorder %v1591_v39, 17  ;;  %vm142_vm3 = vcmp.lt.s32.totalorder %v1591_v39, 1  ;;  %v148_v55 = vrot.slane %v1562_v25, 3 }
   0xa   :  { %v147_v56 = vrot.slane %v1552_v23, 3  ;;  %v149_v57 = vrot.slane %v1567_v26, 3  ;;  %v150_v58 = vrot.slane %v1557_v24, 3  ;;  %v198_v59 = vrot.slane %v1552_v23, 5 }
   0xb   :  { %v182_v40 = vrot.slane %v175_v36, %v1574_v29  ;;  %vm193_vm4 = vcmp.lt.s32.totalorder %v1591_v39, 127  ;;  %vm370_vm5 = vcmask 1040384   ;;  %v200_v17 = vrot.slane %v1567_v26, 5 }
   0xc   :  { %86 = vrot.lane.b32.xlu1 %v56_v9, %s1423_s29  ;;  %82 = vrot.lane.b32.xlu0 %v48_v10, %s1423_s29  ;;  %v223_v20 = vrot.slane %v1552_v23, 6  ;;  %v226_v27 = vrot.slane %v1557_v24, 6  ;;  %v224_v28 = vrot.slane %v1562_v25, 6  ;;  %v249_v33 = vrot.slane %v1562_v25, 7 }
   0xd   :  { %v1603_v46 = vmul.f32 %v182_v40, %v1486_v2  ;;  %v201_v2 = vrot.slane %v1557_v24, 5  ;;  %vm375_vm6 = vcmask 1041408   ;;  %vm380_vm7 = vcmask 1042432  }
   0xe   :  { %vm218_vm8 = vcmp.lt.s32.totalorder %v1591_v39, 113  ;;  %vm243_vm9 = vcmp.lt.s32.totalorder %v1591_v39, 112  ;;  %vm385_vm10 = vcmask 1043456   ;;  %vm390_vm11 = vcmask 1044480  }
   0xf   :  { %v317_v60 = vrot.slane %v1603_v46, %v1492_v4  ;;  %vm268_vm12 = vcmp.lt.s32.totalorder %v1591_v39, 111  ;;  %vm395_vm13 = vcmask 1045504   ;;  %vm400_vm14 = vcmask 1046528  }
  0x10   :  { %111 = vrot.lane.b32.xlu1 %v48_v10, %s1424_s30  ;;  %109 = vrot.lane.b32.xlu0 %v44_v8, %s1424_s30  ;;  %vm1434_vm15 = vmmov 1  }
  0x14   :  { %115 = vrot.lane.b32.xlu1 %v56_v9, %s1424_s30  ;;  %113 = vrot.lane.b32.xlu0 %v52_v7, %s1424_s30 }
  0x18   :  { %63 = vrot.lane.b32.xlu1 %v48_v10, %s1425_s9  ;;  %61 = vrot.lane.b32.xlu0 %v44_v8, %s1425_s9 }
  0x1c   :  { %67 = vrot.lane.b32.xlu1 %v56_v9, %s1425_s9  ;;  %65 = vrot.lane.b32.xlu0 %v52_v7, %s1425_s9 }
  0x20   :  { %136 = vrot.lane.b32.xlu1 %v48_v10, %s1426_s10  ;;  %134 = vrot.lane.b32.xlu0 %v44_v8, %s1426_s10 }
  0x24   :  { %140 = vrot.lane.b32.xlu1 %v56_v9, %s1426_s10  ;;  %138 = vrot.lane.b32.xlu0 %v52_v7, %s1426_s10 }
  0x28   :  { %187 = vrot.lane.b32.xlu1 %v48_v10, %s1427_s11  ;;  %185 = vrot.lane.b32.xlu0 %v44_v8, %s1427_s11 }
  0x2c   :  { %191 = vrot.lane.b32.xlu1 %v56_v9, %s1427_s11  ;;  %189 = vrot.lane.b32.xlu0 %v52_v7, %s1427_s11 }
  0x30   :  { %212 = vrot.lane.b32.xlu1 %v48_v10, %s1428_s12  ;;  %210 = vrot.lane.b32.xlu0 %v44_v8, %s1428_s12 }
  0x34   :  { %216 = vrot.lane.b32.xlu1 %v56_v9, %s1428_s12  ;;  %214 = vrot.lane.b32.xlu0 %v52_v7, %s1428_s12 }
  0x38   :  { %237 = vrot.lane.b32.xlu1 %v48_v10, %s1429_s13  ;;  %235 = vrot.lane.b32.xlu0 %v44_v8, %s1429_s13 }
  0x3c   :  { %241 = vrot.lane.b32.xlu1 %v56_v9, %s1429_s13  ;;  %239 = vrot.lane.b32.xlu0 %v52_v7, %s1429_s13 }
  0x40   :  { %262 = vrot.lane.b32.xlu1 %v48_v10, %s1431_s14  ;;  %260 = vrot.lane.b32.xlu0 %v44_v8, %s1431_s14 }
  0x44   :  { %266 = vrot.lane.b32.xlu1 %v56_v9, %s1431_s14  ;;  %264 = vrot.lane.b32.xlu0 %v52_v7, %s1431_s14  ;;  %v199_v7 = vrot.slane %v1562_v25, 5 }
  0x48   :  { %411 = vperm.xlu0 %1418, %v39_v13  }
  0x7a   :  { %v85_v14 = vpop.permute.xlu1 %84  ;;  %v81_v15 = vpop.permute.xlu0 %80 }
  0x7e   :  { %v87_v18 = vpop.permute.xlu1 %86  ;;  %v83_v19 = vpop.permute.xlu0 %82 }
  0x7f   :  { %v92_v54 = vsel %vm88_vm0, %v87_v18, %v81_v15  ;;  %v89_v10 = vsel %vm88_vm0, %v85_v14, %v87_v18  ;;  %v90_v13 = vsel %vm88_vm0, %v83_v19, %v85_v14  ;;  %v91_v16 = vsel %vm88_vm0, %v81_v15, %v83_v19 }
  0x80   :  { %v1636_v12 = vmul.f32 %v97_v43, %v92_v54  ;;  %v225_v18 = vrot.slane %v1567_v26, 6  ;;  %v251_v14 = vrot.slane %v1557_v24, 7  ;;  %v108_v15 = vmul.f32 %v100_v44, %v89_v10 }
  0x81   :  { %v106_v19 = vmul.f32 %v98_v45, %v91_v16  ;;  %v107_v36 = vmul.f32 %v99_v47, %v90_v13 }
  0x82   :  { %v1545_v21 = vpop.permute.xlu1 %111  ;;  %v1547_v22 = vpop.permute.xlu0 %109  ;;  %v281_v0 = vrot.slane %v1636_v12, 7 }
  0x83   :  { %v120_v11 = vsel %vm117_vm1, %v1547_v22, %v1545_v21 }
  0x86   :  { %v1576_v30 = vpop.permute.xlu1 %115  ;;  %v1578_v31 = vpop.permute.xlu0 %113 }
  0x87   :  { %v121_v44 = vsel %vm117_vm1, %v1576_v30, %v1547_v22  ;;  %v119_v45 = vsel %vm117_vm1, %v1545_v21, %v1578_v31  ;;  %v118_v47 = vsel %vm117_vm1, %v1578_v31, %v1576_v30 }
  0x88   :  { %v130_v13 = vmul.f32 %v122_v49, %v121_v44  ;;  %v132_v16 = vmul.f32 %v124_v52, %v119_v45  ;;  %v133_v61 = vmul.f32 %v125_v53, %v118_v47  ;;  %v284_v49 = vrot.slane %v108_v15, 7 }
  0x8a   :  { %v1582_v34 = vpop.permute.xlu1 %63  ;;  %v1584_v35 = vpop.permute.xlu0 %61  ;;  %v293_v44 = vrot.slane %v130_v13, 6  ;;  %v295_v45 = vrot.slane %v132_v16, 6 }
  0x8b   :  { %v74_v10 = vsel %vm71_vm2, %v1584_v35, %v1582_v34 }
  0x8c   :  { %v77_v8 = vmul.f32 %v74_v10, %v1562_v25 }
  0x8e   :  { %v1586_v37 = vpop.permute.xlu1 %67  ;;  %v1588_v38 = vpop.permute.xlu0 %65 }
  0x8f   :  { %v75_v22 = vsel %vm71_vm2, %v1586_v37, %v1584_v35  ;;  %v73_v21 = vsel %vm71_vm2, %v1582_v34, %v1588_v38  ;;  %v72_v30 = vsel %vm71_vm2, %v1588_v38, %v1586_v37  ;;  %v131_v34 = vmul.f32 %v123_v48, %v120_v11 }
  0x90   :  { %v76_v32 = vmul.f32 %v75_v22, %v1552_v23  ;;  %v79_v54 = vmul.f32 %v72_v30, %v1557_v24 }
  0x91   :  { %v294_v53 = vrot.slane %v131_v34, 6 }
  0x92   :  { %v1594_v41 = vpop.permute.xlu1 %136  ;;  %v1596_v42 = vpop.permute.xlu0 %134  ;;  %v371_v15 = vsel %vm370_vm5, %v76_v32, %v281_v0 }
  0x93   :  { %v145_v31 = vsel %vm142_vm3, %v1596_v42, %v1594_v41  ;;  %v376_v32 = vsel %vm375_vm6, %v371_v15, %v293_v44 }
  0x96   :  { %v141_v50 = vpop.permute.xlu1 %140  ;;  %v139_v51 = vpop.permute.xlu0 %138 }
  0x97   :  { %v146_v35 = vsel %vm142_vm3, %v141_v50, %v1596_v42  ;;  %v144_v12 = vsel %vm142_vm3, %v1594_v41, %v139_v51  ;;  %v143_v37 = vsel %vm142_vm3, %v139_v51, %v141_v50  ;;  %v78_v42 = vmul.f32 %v73_v21, %v1567_v26 }
  0x98   :  { %v156_v41 = vmul.f32 %v148_v55, %v145_v31  ;;  %v155_v11 = vmul.f32 %v147_v56, %v146_v35  ;;  %v157_v48 = vmul.f32 %v149_v57, %v144_v12  ;;  %v282_v50 = vrot.slane %v106_v19, 7 }
  0x99   :  { %v283_v51 = vrot.slane %v107_v36, 7  ;;  %v158_v52 = vmul.f32 %v150_v58, %v143_v37  ;;  %v296_v56 = vrot.slane %v133_v61, 6  ;;  %v374_v58 = vsel %vm370_vm5, %v79_v54, %v284_v49 }
  0x9a   :  { %v1624_v62 = vpop.permute.xlu1 %187  ;;  %v1626_v63 = vpop.permute.xlu0 %185  ;;  %v372_v57 = vsel %vm370_vm5, %v77_v8, %v282_v50  ;;  %v306_v36 = vrot.slane %v156_v41, 5  ;;  %v305_v22 = vrot.slane %v155_v11, 5  ;;  %v307_v21 = vrot.slane %v157_v48, 5 }
  0x9b   :  { %v196_v47 = vsel %vm193_vm4, %v1626_v63, %v1624_v62  ;;  %v373_v19 = vsel %vm370_vm5, %v78_v42, %v283_v51  ;;  %v308_v30 = vrot.slane %v158_v52, 5  ;;  %v377_v8 = vsel %vm375_vm6, %v372_v57, %v294_v53 }
  0x9c   :  { %v206_v31 = vmul.f32 %v198_v59, %v196_v47  ;;  %v378_v54 = vsel %vm375_vm6, %v373_v19, %v295_v45  ;;  %v379_v59 = vsel %vm375_vm6, %v374_v58, %v296_v56  ;;  %v382_v13 = vsel %vm380_vm7, %v377_v8, %v306_v36  ;;  %vm1331_vm6 = vmpackc.low %vm370_vm5, %vm1434_vm15 }
  0x9d   :  { %v381_v16 = vsel %vm380_vm7, %v376_v32, %v305_v22  ;;  %v383_v41 = vsel %vm380_vm7, %v378_v54, %v307_v21  ;;  %v2369_v19 = vrot.slane %v1552_v23, 7  ;;  %v2371_v21 = vrot.slane %v1603_v46, %v1498_v6  ;;  %v1805_v32 = vld [vmem:[%s2358_s1 + $0x38] sm:$0x1]  ;;  %v1810_v54 = vld [vmem:[%s2358_s1 + $0x28] sm:$0x1] }
  0x9e   :  { %v1651_v40 = vpop.permute.xlu1 %191  ;;  %v1653_v43 = vpop.permute.xlu0 %189  ;;  %vm414_vm5 = vcmask 130048  }
  0x9f   :  { %v197_v61 = vsel %vm193_vm4, %v1651_v40, %v1626_v63  ;;  %v195_v0 = vsel %vm193_vm4, %v1624_v62, %v1653_v43  ;;  %v194_v63 = vsel %vm193_vm4, %v1653_v43, %v1651_v40  ;;  %v384_v40 = vsel %vm380_vm7, %v379_v59, %v308_v30 }
  0xa0   :  { %v209_v37 = vmul.f32 %v201_v2, %v197_v61  ;;  %v207_v42 = vmul.f32 %v199_v7, %v195_v0  ;;  %v338_v43 = vrot.slane %v206_v31, 3  ;;  %v208_v48 = vmul.f32 %v200_v17, %v194_v63 }
  0xa1   :  { %v387_v30 = vsel %vm385_vm10, %v382_v13, %v2371_v21  ;;  %v2372_v31 = vrot.slane %v1603_v46, %v1495_v5  ;;  %vm847_vm7 = vcmask 588800  }
  0xa2   :  { %v213_v38 = vpop.permute.xlu1 %212  ;;  %v211_v9 = vpop.permute.xlu0 %210  ;;  %v340_v57 = vrot.slane %v208_v48, 3 }
  0xa3   :  { %v221_v49 = vsel %vm218_vm8, %v211_v9, %v213_v38  ;;  %v389_v61 = vsel %vm385_vm10, %v384_v40, %v2372_v31 }
  0xa4   :  { %v231_v45 = vmul.f32 %v223_v20, %v221_v49  ;;  %v2370_v20 = vrot.slane %v1603_v46, %v1489_v3 }
  0xa6   :  { %v217_v10 = vpop.permute.xlu1 %216  ;;  %v215_v55 = vpop.permute.xlu0 %214 }
  0xa7   :  { %v222_v62 = vsel %vm218_vm8, %v217_v10, %v211_v9  ;;  %v220_v34 = vsel %vm218_vm8, %v213_v38, %v215_v55  ;;  %v219_v11 = vsel %vm218_vm8, %v215_v55, %v217_v10  ;;  %v339_v38 = vrot.slane %v207_v42, 3 }
  0xa8   :  { %v234_v2 = vmul.f32 %v226_v27, %v222_v62  ;;  %v232_v7 = vmul.f32 %v224_v28, %v220_v34  ;;  %v386_v27 = vsel %vm385_vm10, %v381_v16, %v317_v60  ;;  %v341_v28 = vrot.slane %v209_v37, 3  ;;  %v1817_v34 = vld [vmem:[%s2358_s1 + $0x30] sm:$0x1] }
  0xa9   :  { %v233_v44 = vmul.f32 %v225_v18, %v219_v11  ;;  %v2368_v55 = vrot.slane %v1567_v26, 7  ;;  %v391_v22 = vsel %vm390_vm11, %v386_v27, %v338_v43 }
  0xaa   :  { %v238_v35 = vpop.permute.xlu1 %237  ;;  %v236_v12 = vpop.permute.xlu0 %235  ;;  %v353_v15 = vrot.slane %v234_v2, 2  ;;  %v351_v60 = vrot.slane %v232_v7, 2  ;;  %v394_v46 = vsel %vm390_vm11, %v389_v61, %v341_v28 }
  0xab   :  { %v246_v52 = vsel %vm243_vm9, %v236_v12, %v238_v35  ;;  %v352_v0 = vrot.slane %v233_v44, 2 }
  0xac   :  { %v256_v58 = vmul.f32 %v2369_v19, %v246_v52  ;;  %v399_v40 = vsel %vm395_vm13, %v394_v46, %v353_v15 }
  0xae   :  { %v242_v50 = vpop.permute.xlu1 %241  ;;  %v240_v51 = vpop.permute.xlu0 %239  ;;  %v362_v16 = vrot.slane %v256_v58, 1 }
  0xaf   :  { %v247_v53 = vsel %vm243_vm9, %v242_v50, %v236_v12  ;;  %v244_v17 = vsel %vm243_vm9, %v240_v51, %v242_v50  ;;  %v245_v9 = vsel %vm243_vm9, %v238_v35, %v240_v51  ;;  %v392_v35 = vsel %vm390_vm11, %v387_v30, %v339_v38  ;;  %v565_v30 = vld [vmem:[%s2360_s5] sm:$0xff] }
  0xb0   :  { %v259_v47 = vmul.f32 %v251_v14, %v247_v53  ;;  %v257_v10 = vmul.f32 %v249_v33, %v245_v9  ;;  %v258_v56 = vmul.f32 %v2368_v55, %v244_v17  ;;  %v388_v14 = vsel %vm385_vm10, %v383_v41, %v2370_v20  ;;  %v1790_v33 = vld [vmem:[%s2358_s1 + $0x20] sm:$0x1] }
  0xb1   :  { %v350_v12 = vrot.slane %v231_v45, 2  ;;  %v393_v13 = vsel %vm390_vm11, %v388_v14, %v340_v57  ;;  %v397_v41 = vsel %vm395_vm13, %v392_v35, %v351_v60 }
  0xb2   :  { %v263_v36 = vpop.permute.xlu1 %262  ;;  %v261_v18 = vpop.permute.xlu0 %260  ;;  %v365_v59 = vrot.slane %v259_v47, 1  ;;  %v363_v63 = vrot.slane %v257_v10, 1  ;;  %v364_v62 = vrot.slane %v258_v56, 1  ;;  %v398_v51 = vsel %vm395_vm13, %v393_v13, %v352_v0  ;;  %v38_v47 = vld [vmem:[%s2359_s2] sm:$0xff] }
  0xb3   :  { %v271_v8 = vsel %vm268_vm12, %v261_v18, %v263_v36  ;;  %v396_v17 = vsel %vm395_vm13, %v391_v22, %v350_v12  ;;  %v2373_v10 = vmov 0.0   ;;  %v1921_v12 = vrot.slane %v1562_v25, %v1492_v4 }
  0xb4   :  { %v273_v43 = vmul.f32 %v271_v8, %v1790_v33  ;;  %v402_v52 = vsel %vm400_vm14, %v397_v41, %v363_v63  ;;  %v404_v53 = vsel %vm400_vm14, %v399_v40, %v365_v59  ;;  %v403_v9 = vsel %vm400_vm14, %v398_v51, %v364_v62 }
  0xb5   :  { %v401_v38 = vsel %vm400_vm14, %v396_v17, %v362_v16  ;;  %v1925_v59 = vrot.slane %v1562_v25, %v1498_v6  ;;  %v1931_v62 = vrot.slane %v1552_v23, %v1492_v4  ;;  %v1945_v40 = vrot.slane %v1552_v23, %v1498_v6 }
  0xb6   :  { %v267_v37 = vpop.permute.xlu1 %266  ;;  %v265_v42 = vpop.permute.xlu0 %264  ;;  %v1333_v45 = vpack.c.bf16 %v273_v43, %v401_v38 }
  0xb7   :  { %v272_v11 = vsel %vm268_vm12, %v267_v37, %v261_v18  ;;  %v269_v48 = vsel %vm268_vm12, %v265_v42, %v267_v37  ;;  %v270_v49 = vsel %vm268_vm12, %v263_v36, %v265_v42  ;;  %v1935_v37 = vrot.slane %v1557_v24, %v1492_v4 }
  0xb8   :  { %v276_v2 = vmul.f32 %v272_v11, %v1805_v32  ;;  %v274_v7 = vmul.f32 %v270_v49, %v1810_v54  ;;  %v275_v50 = vmul.f32 %v269_v48, %v1817_v34  ;;  %v1939_v42 = vrot.slane %v1567_v26, %v1498_v6 }
  0xb9   :  { %v1953_v49 = vrot.slane %v1557_v24, %v1498_v6 }
  0xba   :  { %v1330_v27 = vpack.c.bf16 %v274_v7, %v402_v52  ;;  %v1336_v28 = vpack.c.bf16 %v276_v2, %v404_v53  ;;  %v1339_v44 = vpack.c.bf16 %v275_v50, %v403_v9  ;;  %v1957_v2 = vrot.slane %v1567_v26, %v1492_v4 }
  0xbc   :  { %1332 = vmatprep.subr.msk.bf16.mxu0 %vm1331_vm6, %v1330_v27  ;;  %1338 = vmatprep.subr.msk.bf16.mxu1 %vm1331_vm6, %v1336_v28 }
  0xbd   :  { %1335 = vmatpush1.bf16.msk.msra.mxu0 %vm1331_vm6, %v1333_v45  ;;  %1341 = vmatpush1.bf16.msk.msra.mxu1 %vm1331_vm6, %v1339_v44 }
  0xc0   :  { %1322 = vmatmul.mubr.msk.f32.vlgmr.msra.gmra.mrb[0].mxu0 %vm414_vm5, %v38_v47  ;;  %1325 = vmatmul.mubr.msk.f32.vlgmr.msra.gmra.mrb[0].mxu1 %vm414_vm5, %v38_v47 }
  0xc1   :  { %915 = vmatprep.mubr.f32.mxu0 %v2373_v10  ;;  %986 = vmatprep.mubr.f32.mxu1 %v2373_v10 }
  0xc7   :  { %v412_v55 = vpop.permute.xlu0 %411 }
 0x193   :  { %v484_v56 = vpop.f32.mrb[0].mxu0  ;;  %v555_v57 = vpop.f32.mrb[0].mxu1 }
 0x194   :  { %v485_v15 = vadd.f32 %v484_v56, %v412_v55  ;;  %v556_v60 = vadd.f32 %v555_v57, %v412_v55  ;;  %v486_v19 = vpop.f32.mrb[1].mxu0  ;;  %v557_v58 = vpop.f32.mrb[1].mxu1 }
 0x195   :  { %v487_v22 = vadd.f32 %v486_v19, %v412_v55  ;;  %v558_v14 = vadd.f32 %v557_v58, %v412_v55 }
 0x196   :  { %v1844_v36 = vmax.f32 %v485_v15, 0.0  ;;  %v1846_v18 = vmax.f32 %v556_v60, 0.0 }
 0x197   :  { %v1852_v20 = vmax.f32 %v487_v22, 0.0  ;;  %v1858_v21 = vmax.f32 %v558_v14, 0.0  ;;  %v1977_v22 = vrot.slane %v1562_v25, %v1489_v3  ;;  %v1981_v14 = vrot.slane %v1562_v25, %v1495_v5 }
 0x198   :  { %570 = vrot.lane.b32.xlu0 %v1846_v18, %s1425_s9  ;;  %566 = vrot.lane.b32.xlu1 %v1844_v36, %s1425_s9 }
 0x19c   :  { %598 = vrot.lane.b32.xlu0 %v1844_v36, %s1423_s29  ;;  %568 = vrot.lane.b32.xlu1 %v1852_v20, %s1425_s9 }
 0x1a0   :  { %602 = vrot.lane.b32.xlu0 %v1846_v18, %s1423_s29  ;;  %572 = vrot.lane.b32.xlu1 %v1858_v21, %s1425_s9 }
 0x1a4   :  { %630 = vrot.lane.b32.xlu0 %v1844_v36, %s1424_s30  ;;  %600 = vrot.lane.b32.xlu1 %v1852_v20, %s1423_s29 }
 0x1a8   :  { %634 = vrot.lane.b32.xlu0 %v1846_v18, %s1424_s30  ;;  %604 = vrot.lane.b32.xlu1 %v1858_v21, %s1423_s29 }
 0x1ac   :  { %662 = vrot.lane.b32.xlu0 %v1844_v36, %s1426_s10  ;;  %632 = vrot.lane.b32.xlu1 %v1852_v20, %s1424_s30 }
 0x1b0   :  { %666 = vrot.lane.b32.xlu0 %v1846_v18, %s1426_s10  ;;  %636 = vrot.lane.b32.xlu1 %v1858_v21, %s1424_s30 }
 0x1b4   :  { %714 = vrot.lane.b32.xlu0 %v1844_v36, %s1427_s11  ;;  %664 = vrot.lane.b32.xlu1 %v1852_v20, %s1426_s10 }
 0x1b8   :  { %718 = vrot.lane.b32.xlu0 %v1846_v18, %s1427_s11  ;;  %668 = vrot.lane.b32.xlu1 %v1858_v21, %s1426_s10 }
 0x1bc   :  { %746 = vrot.lane.b32.xlu0 %v1844_v36, %s1428_s12  ;;  %716 = vrot.lane.b32.xlu1 %v1852_v20, %s1427_s11 }
 0x1c0   :  { %750 = vrot.lane.b32.xlu0 %v1846_v18, %s1428_s12  ;;  %720 = vrot.lane.b32.xlu1 %v1858_v21, %s1427_s11 }
 0x1c4   :  { %778 = vrot.lane.b32.xlu0 %v1844_v36, %s1429_s13  ;;  %748 = vrot.lane.b32.xlu1 %v1852_v20, %s1428_s12 }
 0x1c8   :  { %782 = vrot.lane.b32.xlu0 %v1846_v18, %s1429_s13  ;;  %752 = vrot.lane.b32.xlu1 %v1858_v21, %s1428_s12 }
 0x1cc   :  { %810 = vrot.lane.b32.xlu0 %v1844_v36, %s1431_s14  ;;  %780 = vrot.lane.b32.xlu1 %v1852_v20, %s1429_s13 }
 0x1d0   :  { %814 = vrot.lane.b32.xlu0 %v1846_v18, %s1431_s14  ;;  %784 = vrot.lane.b32.xlu1 %v1858_v21, %s1429_s13 }
 0x1d4   :  { %844 = vperm.xlu0 %1418, %v565_v30   ;;  %812 = vrot.lane.b32.xlu1 %v1852_v20, %s1431_s14 }
 0x1d8   :  { %816 = vrot.lane.b32.xlu1 %v1858_v21, %s1431_s14 }
 0x20a   :  { %v571_v31 = vpop.permute.xlu0 %570  ;;  %v567_v61 = vpop.permute.xlu1 %566 }
 0x20e   :  { %v599_v0 = vpop.permute.xlu0 %598  ;;  %v569_v8 = vpop.permute.xlu1 %568 }
 0x20f   :  { %v576_v63 = vsel %vm71_vm2, %v567_v61, %v569_v8  ;;  %v575_v51 = vsel %vm71_vm2, %v569_v8, %v571_v31 }
 0x210   :  { %v595_v43 = vmul.f32 %v1921_v12, %v576_v63  ;;  %v596_v47 = vmul.f32 %v1957_v2, %v575_v51  ;;  %v1997_v63 = vrot.slane %v1567_v26, %v1495_v5 }
 0x212   :  { %v603_v35 = vpop.permute.xlu0 %602  ;;  %v573_v46 = vpop.permute.xlu1 %572 }
 0x213   :  { %v574_v7 = vsel %vm71_vm2, %v571_v31, %v573_v46  ;;  %v577_v50 = vsel %vm71_vm2, %v573_v46, %v567_v61  ;;  %v696_v31 = vsub.s32 4, %v1481_v1  ;;  %v1988_v61 = vrot.slane %v1552_v23, %v1489_v3 }
 0x214   :  { %v594_v28 = vmul.f32 %v1931_v62, %v577_v50  ;;  %v597_v38 = vmul.f32 %v1935_v37, %v574_v7  ;;  %v1993_v46 = vrot.slane %v1557_v24, %v1489_v3  ;;  %v2011_v7 = vrot.slane %v1557_v24, %v1495_v5 }
 0x215   :  { %v2015_v50 = vrot.slane %v1567_v26, %v1489_v3  ;;  %v2030_v3 = vrot.slane %v1562_v25, %v696_v31 }
 0x216   :  { %v631_v13 = vpop.permute.xlu0 %630  ;;  %v601_v16 = vpop.permute.xlu1 %600 }
 0x217   :  { %v608_v41 = vsel %vm88_vm0, %v599_v0, %v601_v16  ;;  %v607_v11 = vsel %vm88_vm0, %v601_v16, %v603_v35 }
 0x218   :  { %v627_v48 = vmul.f32 %v1925_v59, %v608_v41  ;;  %v628_v9 = vmul.f32 %v1939_v42, %v607_v11  ;;  %v2003_v41 = vrot.slane %v1552_v23, %v1495_v5 }
 0x21a   :  { %v635_v52 = vpop.permute.xlu0 %634  ;;  %v605_v53 = vpop.permute.xlu1 %604  ;;  %v1342_v17 = vpack.c.bf16 %v627_v48, %v595_v43  ;;  %v1360_v60 = vpack.c.bf16 %v628_v9, %v596_v47 }
 0x21b   :  { %v606_v6 = vsel %vm88_vm0, %v603_v35, %v605_v53  ;;  %v609_v27 = vsel %vm88_vm0, %v605_v53, %v599_v0  ;;  %v728_v35 = vsub.s32 5, %v1481_v1 }
 0x21c   :  { %v626_v44 = vmul.f32 %v1945_v40, %v609_v27  ;;  %v629_v45 = vmul.f32 %v1953_v49, %v606_v6  ;;  %1343 = vmatprep.subr.bf16.mxu0 %v1342_v17  ;;  %v2022_v17 = vrot.slane %v1552_v23, %v696_v31 }
 0x21e   :  { %v1344_v55 = vpack.c.bf16 %v626_v44, %v594_v28  ;;  %v663_v56 = vpop.permute.xlu0 %662  ;;  %v633_v57 = vpop.permute.xlu1 %632  ;;  %v1358_v15 = vpack.c.bf16 %v629_v45, %v597_v38  ;;  %v2027_v28 = vrot.slane %v1552_v23, %v728_v35  ;;  %v2038_v45 = vrot.slane %v1562_v25, %v728_v35 }
 0x21f   :  { %v640_v30 = vsel %vm117_vm1, %v631_v13, %v633_v57  ;;  %v639_v9 = vsel %vm117_vm1, %v633_v57, %v635_v52 }
 0x220   :  { %1345 = vmatpush1.bf16.msra.mxu0 %v1344_v55  ;;  %1359 = vmatprep.subr.bf16.mxu1 %v1358_v15  ;;  %v659_v43 = vmul.f32 %v1977_v22, %v640_v30  ;;  %v660_v15 = vmul.f32 %v2015_v50, %v639_v9 }
 0x221   :  { %1361 = vmatpush1.bf16.msra.mxu1 %v1360_v60  ;;  %v2046_v60 = vrot.slane %v1567_v26, %v696_v31 }
 0x222   :  { %v667_v19 = vpop.permute.xlu0 %666  ;;  %v637_v58 = vpop.permute.xlu1 %636 }
 0x223   :  { %v638_v51 = vsel %vm117_vm1, %v635_v52, %v637_v58  ;;  %v641_v53 = vsel %vm117_vm1, %v637_v58, %v631_v13 }
 0x224   :  { %v658_v52 = vmul.f32 %v1988_v61, %v641_v53  ;;  %v661_v47 = vmul.f32 %v1993_v46, %v638_v51 }
 0x226   :  { %v715_v0 = vpop.permute.xlu0 %714  ;;  %v665_v8 = vpop.permute.xlu1 %664 }
 0x227   :  { %v672_v16 = vsel %vm142_vm3, %v663_v56, %v665_v8  ;;  %v671_v11 = vsel %vm142_vm3, %v665_v8, %v667_v19  ;;  %v710_v8 = vmul.f32 %v2022_v17, %v1844_v36  ;;  %v2065_v36 = vrot.slane %v1557_v24, %v728_v35 }
 0x228   :  { %v691_v48 = vmul.f32 %v1981_v14, %v672_v16  ;;  %v692_v38 = vmul.f32 %v1997_v63, %v671_v11 }
 0x22a   :  { %v719_v6 = vpop.permute.xlu0 %718  ;;  %v669_v27 = vpop.permute.xlu1 %668  ;;  %v1346_v5 = vpack.c.bf16 %v691_v48, %v659_v43  ;;  %v711_v43 = vmul.f32 %v2030_v3, %v1852_v20  ;;  %v1364_v11 = vpack.c.bf16 %v692_v38, %v660_v15 }
 0x22b   :  { %v670_v13 = vsel %vm142_vm3, %v667_v19, %v669_v27  ;;  %v673_v44 = vsel %vm142_vm3, %v669_v27, %v663_v56  ;;  %v2049_v19 = vrot.slane %v1557_v24, %v696_v31  ;;  %v2060_v31 = vrot.slane %v1567_v26, %v728_v35 }
 0x22c   :  { %v690_v55 = vmul.f32 %v2003_v41, %v673_v44  ;;  %v693_v57 = vmul.f32 %v2011_v7, %v670_v13  ;;  %1347 = vmatprep.subr.bf16.mxu0 %v1346_v5 }
 0x22d   :  { %v713_v35 = vmul.f32 %v2049_v19, %v1858_v21 }
 0x22e   :  { %v1348_v56 = vpack.c.bf16 %v690_v55, %v658_v52  ;;  %v747_v58 = vpop.permute.xlu0 %746  ;;  %v717_v30 = vpop.permute.xlu1 %716  ;;  %v1362_v16 = vpack.c.bf16 %v693_v57, %v661_v47  ;;  %v712_v52 = vmul.f32 %v2046_v60, %v1846_v18 }
 0x22f   :  { %v723_v48 = vsel %vm193_vm4, %v717_v30, %v719_v6  ;;  %v724_v51 = vsel %vm193_vm4, %v715_v0, %v717_v30 }
 0x230   :  { %v742_v53 = vmul.f32 %v2027_v28, %v724_v51  ;;  %v743_v9 = vmul.f32 %v2038_v45, %v723_v48  ;;  %1349 = vmatpush1.bf16.msra.mxu0 %v1348_v56  ;;  %1363 = vmatprep.subr.bf16.mxu1 %v1362_v16 }
 0x231   :  { %1365 = vmatpush1.bf16.msra.mxu1 %v1364_v11 }
 0x232   :  { %v1352_v20 = vpack.c.bf16 %v742_v53, %v710_v8  ;;  %v751_v27 = vpop.permute.xlu0 %750  ;;  %v721_v5 = vpop.permute.xlu1 %720  ;;  %v1350_v38 = vpack.c.bf16 %v743_v9, %v711_v43 }
 0x233   :  { %v722_v13 = vsel %vm193_vm4, %v719_v6, %v721_v5  ;;  %v725_v44 = vsel %vm193_vm4, %v721_v5, %v715_v0  ;;  %v760_v6 = vsub.s32 6, %v1481_v1  ;;  %v792_v0 = vsub.s32 7, %v1481_v1 }
 0x234   :  { %v744_v47 = vmul.f32 %v2060_v31, %v722_v13  ;;  %v745_v55 = vmul.f32 %v2065_v36, %v725_v44  ;;  %1351 = vmatprep.subr.bf16.mxu0 %v1350_v38 }
 0x235   :  { %1353 = vmatpush1.bf16.msra.mxu0 %v1352_v20  ;;  %v2080_v16 = vrot.slane %v1552_v23, %v760_v6  ;;  %v2083_v43 = vrot.slane %v1562_v25, %v760_v6  ;;  %v2086_v21 = vrot.slane %v1552_v23, %v792_v0  ;;  %v2089_v11 = vrot.slane %v1562_v25, %v792_v0 }
 0x236   :  { %v1368_v57 = vpack.c.bf16 %v744_v47, %v712_v52  ;;  %v779_v15 = vpop.permute.xlu0 %778  ;;  %v749_v56 = vpop.permute.xlu1 %748  ;;  %v1366_v30 = vpack.c.bf16 %v745_v55, %v713_v35  ;;  %v2096_v51 = vrot.slane %v1567_v26, %v760_v6  ;;  %v2099_v53 = vrot.slane %v1557_v24, %v760_v6 }
 0x237   :  { %v755_v48 = vsel %vm218_vm8, %v749_v56, %v751_v27  ;;  %v756_v1 = vsel %vm218_vm8, %v747_v58, %v749_v56  ;;  %v2106_v20 = vrot.slane %v1567_v26, %v792_v0  ;;  %v2109_v5 = vrot.slane %v1557_v24, %v792_v0 }
 0x238   :  { %1367 = vmatprep.subr.bf16.mxu1 %v1366_v30  ;;  %v774_v38 = vmul.f32 %v2080_v16, %v756_v1  ;;  %v775_v13 = vmul.f32 %v2083_v43, %v755_v48  ;;  %v2125_v6 = vrot.slane %v1790_v33, %v1492_v4  ;;  %v2129_v0 = vrot.slane %v1810_v54, %v1492_v4 }
 0x239   :  { %1369 = vmatpush1.bf16.msra.mxu1 %v1368_v57 }
 0x23a   :  { %v783_v18 = vpop.permute.xlu0 %782  ;;  %v753_v8 = vpop.permute.xlu1 %752 }
 0x23b   :  { %v754_v55 = vsel %vm218_vm8, %v751_v27, %v753_v8  ;;  %v757_v35 = vsel %vm218_vm8, %v753_v8, %v747_v58 }
 0x23c   :  { %v776_v27 = vmul.f32 %v2096_v51, %v754_v55  ;;  %v777_v58 = vmul.f32 %v2099_v53, %v757_v35 }
 0x23e   :  { %v781_v9 = vpop.permute.xlu1 %780  ;;  %v811_v44 = vpop.permute.xlu0 %810 }
 0x23f   :  { %v787_v23 = vsel %vm243_vm9, %v781_v9, %v783_v18  ;;  %v788_v25 = vsel %vm243_vm9, %v779_v15, %v781_v9 }
 0x240   :  { %v806_v52 = vmul.f32 %v2086_v21, %v788_v25  ;;  %v807_v47 = vmul.f32 %v2089_v11, %v787_v23 }
 0x242   :  { %v1356_v26 = vpack.c.bf16 %v806_v52, %v774_v38  ;;  %v785_v57 = vpop.permute.xlu1 %784  ;;  %v1354_v56 = vpack.c.bf16 %v807_v47, %v775_v13  ;;  %v2143_v38 = vrot.slane %v1817_v34, %v1492_v4  ;;  %v2147_v13 = vrot.slane %v1805_v32, %v1492_v4  ;;  %v564_v52 = vld [vmem:[%s2361_s4] sm:$0xff] }
 0x243   :  { %v786_v24 = vsel %vm243_vm9, %v783_v18, %v785_v57  ;;  %v789_v30 = vsel %vm243_vm9, %v785_v57, %v779_v15  ;;  %v815_v18 = vpop.permute.xlu0 %814 }
 0x244   :  { %v808_v8 = vmul.f32 %v2106_v20, %v786_v24  ;;  %v809_v48 = vmul.f32 %v2109_v5, %v789_v30  ;;  %1355 = vmatprep.subr.bf16.mxu0 %v1354_v56 }
 0x245   :  { %1357 = vmatpush1.bf16.msra.mxu0 %v1356_v26 }
 0x246   :  { %v1372_v15 = vpack.c.bf16 %v808_v8, %v776_v27  ;;  %v813_v1 = vpop.permute.xlu1 %812  ;;  %v1370_v9 = vpack.c.bf16 %v809_v48, %v777_v58 }
 0x247   :  { %v819_v33 = vsel %vm268_vm12, %v813_v1, %v815_v18  ;;  %v820_v54 = vsel %vm268_vm12, %v811_v44, %v813_v1 }
 0x248   :  { %v838_v23 = vmul.f32 %v2125_v6, %v820_v54  ;;  %v839_v25 = vmul.f32 %v2129_v0, %v819_v33  ;;  %1371 = vmatprep.subr.bf16.mxu1 %v1370_v9 }
 0x249   :  { %1373 = vmatpush1.bf16.msra.mxu1 %v1372_v15  ;;  %v998_v15 = vld [vmem:[%s2362_s7] sm:$0xff] }
 0x24a   :  { %v817_v47 = vpop.permute.xlu1 %816  ;;  %867 = vmatprep.subr.mxu0 %v839_v25 }
 0x24b   :  { %v818_v55 = vsel %vm268_vm12, %v815_v18, %v817_v47  ;;  %v821_v35 = vsel %vm268_vm12, %v817_v47, %v811_v44  ;;  %868 = vmatpush1.msra.mxu0 %v838_v23 }
 0x24c   :  { %v840_v34 = vmul.f32 %v2143_v38, %v818_v55  ;;  %v841_v4 = vmul.f32 %v2147_v13, %v821_v35  ;;  %1326 = vmatmul.mubr.msk.f32.vlgmr.msra.gmra.mrb[2].mxu0 %vm847_vm7, %v564_v52 }
 0x24d   :  { %1203 = vmatprep.mubr.f32.mxu0 %v2373_v10 }
 0x24e   :  { %938 = vmatprep.subr.mxu1 %v841_v4 }
 0x24f   :  { %939 = vmatpush1.msra.mxu1 %v840_v34 }
 0x250   :  { %1327 = vmatmul.mubr.msk.f32.vlgmr.msra.gmra.mrb[2].mxu1 %vm847_vm7, %v564_v52 }
 0x251   :  { %1274 = vmatprep.mubr.f32.mxu1 %v2373_v10 }
 0x253   :  { %v845_v32 = vpop.permute.xlu0 %844 }
 0x31f   :  { %v917_v26 = vpop.f32.mrb[2].mxu0 }
 0x320   :  { %v918_v57 = vadd.f32 %v917_v26, %v845_v32  ;;  %v919_v56 = vpop.f32.mrb[3].mxu0 }
 0x321   :  { %v920_v44 = vadd.f32 %v919_v56, %v845_v32 }
 0x322   :  { %v2162_v24 = vmax.f32 %v918_v57, 0.0 }
 0x323   :  { %v2164_v30 = vmax.f32 %v920_v44, 0.0  ;;  %v988_v27 = vpop.f32.mrb[2].mxu1 }
 0x324   :  { %v989_v58 = vadd.f32 %v988_v27, %v845_v32  ;;  %v990_v8 = vpop.f32.mrb[3].mxu1  ;;  %999 = vrot.lane.b32.xlu1 %v2162_v24, %s1425_s9 }
 0x325   :  { %v991_v48 = vadd.f32 %v990_v8, %v845_v32  ;;  %1001 = vrot.lane.b32.xlu0 %v2164_v30, %s1425_s9 }
 0x326   :  { %v2170_v10 = vmax.f32 %v989_v58, 0.0 }
 0x327   :  { %v2172_v18 = vmax.f32 %v991_v48, 0.0 }
 0x328   :  { %1003 = vrot.lane.b32.xlu1 %v2170_v10, %s1425_s9 }
 0x329   :  { %1005 = vrot.lane.b32.xlu0 %v2172_v18, %s1425_s9 }
 0x32c   :  { %1015 = vrot.lane.b32.xlu1 %v2162_v24, %s1423_s29 }
 0x32d   :  { %1017 = vrot.lane.b32.xlu0 %v2164_v30, %s1423_s29 }
 0x330   :  { %1019 = vrot.lane.b32.xlu1 %v2170_v10, %s1423_s29 }
 0x331   :  { %1021 = vrot.lane.b32.xlu0 %v2172_v18, %s1423_s29 }
 0x334   :  { %1031 = vrot.lane.b32.xlu1 %v2162_v24, %s1424_s30 }
 0x335   :  { %1033 = vrot.lane.b32.xlu0 %v2164_v30, %s1424_s30 }
 0x338   :  { %1035 = vrot.lane.b32.xlu1 %v2170_v10, %s1424_s30 }
 0x339   :  { %1037 = vrot.lane.b32.xlu0 %v2172_v18, %s1424_s30 }
 0x33c   :  { %1047 = vrot.lane.b32.xlu1 %v2162_v24, %s1426_s10 }
 0x33d   :  { %1049 = vrot.lane.b32.xlu0 %v2164_v30, %s1426_s10 }
 0x340   :  { %1051 = vrot.lane.b32.xlu1 %v2170_v10, %s1426_s10 }
 0x341   :  { %1053 = vrot.lane.b32.xlu0 %v2172_v18, %s1426_s10 }
 0x344   :  { %1067 = vrot.lane.b32.xlu1 %v2162_v24, %s1427_s11 }
 0x345   :  { %1069 = vrot.lane.b32.xlu0 %v2164_v30, %s1427_s11 }
 0x348   :  { %1071 = vrot.lane.b32.xlu1 %v2170_v10, %s1427_s11 }
 0x349   :  { %1073 = vrot.lane.b32.xlu0 %v2172_v18, %s1427_s11 }
 0x34c   :  { %1083 = vrot.lane.b32.xlu1 %v2162_v24, %s1428_s12 }
 0x34d   :  { %1085 = vrot.lane.b32.xlu0 %v2164_v30, %s1428_s12 }
 0x350   :  { %1087 = vrot.lane.b32.xlu1 %v2170_v10, %s1428_s12 }
 0x351   :  { %1089 = vrot.lane.b32.xlu0 %v2172_v18, %s1428_s12 }
 0x354   :  { %1099 = vrot.lane.b32.xlu1 %v2162_v24, %s1429_s13 }
 0x355   :  { %1101 = vrot.lane.b32.xlu0 %v2164_v30, %s1429_s13 }
 0x358   :  { %1103 = vrot.lane.b32.xlu1 %v2170_v10, %s1429_s13 }
 0x359   :  { %1105 = vrot.lane.b32.xlu0 %v2172_v18, %s1429_s13 }
 0x35c   :  { %1115 = vrot.lane.b32.xlu1 %v2162_v24, %s1431_s14 }
 0x35d   :  { %1117 = vrot.lane.b32.xlu0 %v2164_v30, %s1431_s14 }
 0x360   :  { %1119 = vrot.lane.b32.xlu1 %v2170_v10, %s1431_s14 }
 0x361   :  { %1121 = vrot.lane.b32.xlu0 %v2172_v18, %s1431_s14 }
 0x364   :  { %1133 = vperm.xlu1 %1419, %v998_v15  }
 0x396   :  { %v1000_v1 = vpop.permute.xlu1 %999 }
 0x397   :  { %v1002_v9 = vpop.permute.xlu0 %1001 }
 0x398   :  { %v1009_v23 = vsel %vm71_vm2, %v1000_v1, %v1002_v9 }
 0x399   :  { %v1012_v55 = vmul.f32 %v1009_v23, %v1921_v12 }
 0x39a   :  { %v1004_v33 = vpop.permute.xlu1 %1003 }
 0x39b   :  { %v1006_v54 = vpop.permute.xlu0 %1005  ;;  %v1008_v26 = vsel %vm71_vm2, %v1002_v9, %v1004_v33 }
 0x39c   :  { %v1007_v34 = vsel %vm71_vm2, %v1004_v33, %v1006_v54  ;;  %v1010_v4 = vsel %vm71_vm2, %v1006_v54, %v1000_v1  ;;  %v1013_v1 = vmul.f32 %v1008_v26, %v1957_v2 }
 0x39d   :  { %v1011_v58 = vmul.f32 %v1010_v4, %v1931_v62  ;;  %v1014_v8 = vmul.f32 %v1007_v34, %v1935_v37 }
 0x39e   :  { %v1016_v25 = vpop.permute.xlu1 %1015 }
 0x39f   :  { %v1018_v52 = vpop.permute.xlu0 %1017 }
 0x3a0   :  { %v1025_v47 = vsel %vm88_vm0, %v1016_v25, %v1018_v52 }
 0x3a1   :  { %v1028_v35 = vmul.f32 %v1025_v47, %v1925_v59 }
 0x3a2   :  { %v1020_v32 = vpop.permute.xlu1 %1019 }
 0x3a3   :  { %v1024_v57 = vsel %vm88_vm0, %v1018_v52, %v1020_v32  ;;  %v1022_v56 = vpop.permute.xlu0 %1021  ;;  %v1374_v44 = vpack.c.bf16 %v1028_v35, %v1012_v55 }
 0x3a4   :  { %v1029_v27 = vmul.f32 %v1024_v57, %v1939_v42  ;;  %v1023_v12 = vsel %vm88_vm0, %v1020_v32, %v1022_v56  ;;  %v1026_v59 = vsel %vm88_vm0, %v1022_v56, %v1016_v25 }
 0x3a5   :  { %v1027_v48 = vmul.f32 %v1026_v59, %v1945_v40  ;;  %v1030_v15 = vmul.f32 %v1023_v12, %v1953_v49  ;;  %1375 = vmatprep.subr.bf16.mxu0 %v1374_v44 }
 0x3a6   :  { %v1032_v9 = vpop.permute.xlu1 %1031  ;;  %v1392_v23 = vpack.c.bf16 %v1029_v27, %v1013_v1 }
 0x3a7   :  { %v1376_v33 = vpack.c.bf16 %v1027_v48, %v1011_v58  ;;  %v1034_v42 = vpop.permute.xlu0 %1033  ;;  %v1390_v54 = vpack.c.bf16 %v1030_v15, %v1014_v8 }
 0x3a8   :  { %v1041_v62 = vsel %vm117_vm1, %v1032_v9, %v1034_v42 }
 0x3a9   :  { %1377 = vmatpush1.bf16.msra.mxu0 %v1376_v33  ;;  %1391 = vmatprep.subr.bf16.mxu1 %v1390_v54  ;;  %v1044_v2 = vmul.f32 %v1041_v62, %v1977_v22 }
 0x3aa   :  { %1393 = vmatpush1.bf16.msra.mxu1 %v1392_v23  ;;  %v1036_v25 = vpop.permute.xlu1 %1035  ;;  %v1064_v23 = vmul.f32 %v2164_v30, %v2030_v3 }
 0x3ab   :  { %v1038_v52 = vpop.permute.xlu0 %1037  ;;  %v1040_v4 = vsel %vm117_vm1, %v1034_v42, %v1036_v25 }
 0x3ac   :  { %v1039_v55 = vsel %vm117_vm1, %v1036_v25, %v1038_v52  ;;  %v1042_v35 = vsel %vm117_vm1, %v1038_v52, %v1032_v9  ;;  %v1045_v58 = vmul.f32 %v1040_v4, %v2015_v50  ;;  %v1066_v25 = vmul.f32 %v2172_v18, %v2049_v19 }
 0x3ad   :  { %v1043_v44 = vmul.f32 %v1042_v35, %v1988_v61  ;;  %v1046_v27 = vmul.f32 %v1039_v55, %v1993_v46  ;;  %v1063_v46 = vmul.f32 %v2162_v24, %v2022_v17  ;;  %v1065_v17 = vmul.f32 %v2170_v10, %v2046_v60 }
 0x3ae   :  { %v1048_v37 = vpop.permute.xlu1 %1047 }
 0x3af   :  { %v1050_v40 = vpop.permute.xlu0 %1049 }
 0x3b0   :  { %v1057_v49 = vsel %vm142_vm3, %v1048_v37, %v1050_v40 }
 0x3b1   :  { %v1060_v47 = vmul.f32 %v1057_v49, %v1981_v14 }
 0x3b2   :  { %v1052_v34 = vpop.permute.xlu1 %1051 }
 0x3b3   :  { %v1056_v32 = vsel %vm142_vm3, %v1050_v40, %v1052_v34  ;;  %v1054_v26 = vpop.permute.xlu0 %1053  ;;  %v1378_v57 = vpack.c.bf16 %v1060_v47, %v1044_v2 }
 0x3b4   :  { %v1061_v56 = vmul.f32 %v1056_v32, %v1997_v63  ;;  %v1055_v22 = vsel %vm142_vm3, %v1052_v34, %v1054_v26  ;;  %v1058_v14 = vsel %vm142_vm3, %v1054_v26, %v1048_v37 }
 0x3b5   :  { %v1059_v12 = vmul.f32 %v1058_v14, %v2003_v41  ;;  %v1062_v59 = vmul.f32 %v1055_v22, %v2011_v7  ;;  %1379 = vmatprep.subr.bf16.mxu0 %v1378_v57 }
 0x3b6   :  { %v1068_v8 = vpop.permute.xlu1 %1067  ;;  %v1396_v1 = vpack.c.bf16 %v1061_v56, %v1045_v58 }
 0x3b7   :  { %v1380_v48 = vpack.c.bf16 %v1059_v12, %v1043_v44  ;;  %v1070_v63 = vpop.permute.xlu0 %1069  ;;  %v1394_v15 = vpack.c.bf16 %v1062_v59, %v1046_v27 }
 0x3b8   :  { %v1077_v9 = vsel %vm193_vm4, %v1068_v8, %v1070_v63 }
 0x3b9   :  { %1381 = vmatpush1.bf16.msra.mxu0 %v1380_v48  ;;  %1395 = vmatprep.subr.bf16.mxu1 %v1394_v15  ;;  %v1079_v41 = vmul.f32 %v1077_v9, %v2027_v28  ;;  %v997_v9 = vld [vmem:[%s2363_s6] sm:$0xff] }
 0x3ba   :  { %1397 = vmatpush1.bf16.msra.mxu1 %v1396_v1  ;;  %v1072_v61 = vpop.permute.xlu1 %1071 }
 0x3bb   :  { %v1076_v7 = vsel %vm193_vm4, %v1070_v63, %v1072_v61  ;;  %v1074_v50 = vpop.permute.xlu0 %1073  ;;  %v1384_v62 = vpack.c.bf16 %v1079_v41, %v1063_v46 }
 0x3bc   :  { %v1080_v33 = vmul.f32 %v1076_v7, %v2038_v45  ;;  %v1075_v42 = vsel %vm193_vm4, %v1072_v61, %v1074_v50  ;;  %v1078_v54 = vsel %vm193_vm4, %v1074_v50, %v1068_v8 }
 0x3bd   :  { %v1081_v28 = vmul.f32 %v1075_v42, %v2060_v31  ;;  %v1082_v24 = vmul.f32 %v1078_v54, %v2065_v36 }
 0x3be   :  { %v1084_v45 = vpop.permute.xlu1 %1083  ;;  %v1382_v52 = vpack.c.bf16 %v1080_v33, %v1064_v23 }
 0x3bf   :  { %v1400_v37 = vpack.c.bf16 %v1081_v28, %v1065_v17  ;;  %v1086_v40 = vpop.permute.xlu0 %1085  ;;  %v1398_v49 = vpack.c.bf16 %v1082_v24, %v1066_v25  ;;  %v2374_v28 = vlaneseq  ;;  %v1422_v24 = vld [vmem:[%s2356_s0] sm:$0xf] }
 0x3c0   :  { %1383 = vmatprep.subr.bf16.mxu0 %v1382_v52  ;;  %v1093_v31 = vsel %vm218_vm8, %v1084_v45, %v1086_v40 }
 0x3c1   :  { %1385 = vmatpush1.bf16.msra.mxu0 %v1384_v62  ;;  %1399 = vmatprep.subr.bf16.mxu1 %v1398_v49  ;;  %v1095_v55 = vmul.f32 %v1093_v31, %v2080_v16  ;;  %vm1313_vm0 = vcmp.lt.s32.totalorder %v2374_v28, 512 }
 0x3c2   :  { %1401 = vmatpush1.bf16.msra.mxu1 %v1400_v37  ;;  %v1088_v3 = vpop.permute.xlu1 %1087 }
 0x3c3   :  { %v1090_v30 = vpop.permute.xlu0 %1089  ;;  %v1092_v36 = vsel %vm218_vm8, %v1086_v40, %v1088_v3 }
 0x3c4   :  { %v1091_v18 = vsel %vm218_vm8, %v1088_v3, %v1090_v30  ;;  %v1094_v2 = vsel %vm218_vm8, %v1090_v30, %v1084_v45  ;;  %v1096_v32 = vmul.f32 %v1092_v36, %v2083_v43 }
 0x3c5   :  { %v1097_v22 = vmul.f32 %v1091_v18, %v2096_v51  ;;  %v1098_v16 = vmul.f32 %v1094_v2, %v2099_v53 }
 0x3c6   :  { %v1100_v60 = vpop.permute.xlu1 %1099 }
 0x3c7   :  { %v1102_v10 = vpop.permute.xlu0 %1101 }
 0x3c8   :  { %v1109_v19 = vsel %vm243_vm9, %v1100_v60, %v1102_v10 }
 0x3c9   :  { %v1111_v35 = vmul.f32 %v1109_v19, %v2086_v21 }
 0x3ca   :  { %v1104_v47 = vpop.permute.xlu1 %1103 }
 0x3cb   :  { %v1108_v34 = vsel %vm243_vm9, %v1102_v10, %v1104_v47  ;;  %v1106_v4 = vpop.permute.xlu0 %1105  ;;  %v1388_v12 = vpack.c.bf16 %v1111_v35, %v1095_v55 }
 0x3cc   :  { %v1112_v26 = vmul.f32 %v1108_v34, %v2089_v11  ;;  %v1107_v57 = vsel %vm243_vm9, %v1104_v47, %v1106_v4  ;;  %v1110_v56 = vsel %vm243_vm9, %v1106_v4, %v1100_v60 }
 0x3cd   :  { %v1113_v21 = vmul.f32 %v1107_v57, %v2106_v20  ;;  %v1114_v14 = vmul.f32 %v1110_v56, %v2109_v5 }
 0x3ce   :  { %v1116_v44 = vpop.permute.xlu1 %1115  ;;  %v1386_v27 = vpack.c.bf16 %v1112_v26, %v1096_v32 }
 0x3cf   :  { %v1404_v43 = vpack.c.bf16 %v1113_v21, %v1097_v22  ;;  %v1118_v59 = vpop.permute.xlu0 %1117  ;;  %v1402_v11 = vpack.c.bf16 %v1114_v14, %v1098_v16 }
 0x3d0   :  { %1387 = vmatprep.subr.bf16.mxu0 %v1386_v27  ;;  %v1125_v58 = vsel %vm268_vm12, %v1116_v44, %v1118_v59 }
 0x3d1   :  { %1389 = vmatpush1.bf16.msra.mxu0 %v1388_v12  ;;  %1403 = vmatprep.subr.bf16.mxu1 %v1402_v11  ;;  %v1127_v63 = vmul.f32 %v1125_v58, %v2125_v6 }
 0x3d2   :  { %1405 = vmatpush1.bf16.msra.mxu1 %v1404_v43  ;;  %v1120_v51 = vpop.permute.xlu1 %1119 }
 0x3d3   :  { %v1124_v53 = vsel %vm268_vm12, %v1118_v59, %v1120_v51  ;;  %v1122_v20 = vpop.permute.xlu0 %1121 }
 0x3d4   :  { %v1128_v5 = vmul.f32 %v1124_v53, %v2129_v0  ;;  %v1123_v8 = vsel %vm268_vm12, %v1120_v51, %v1122_v20  ;;  %v1126_v48 = vsel %vm268_vm12, %v1122_v20, %v1116_v44 }
 0x3d5   :  { %v1129_v15 = vmul.f32 %v1123_v8, %v2143_v38  ;;  %v1130_v1 = vmul.f32 %v1126_v48, %v2147_v13 }
 0x3d6   :  { %1155 = vmatprep.subr.mxu0 %v1128_v5 }
 0x3d7   :  { %1156 = vmatpush1.msra.mxu0 %v1127_v63  ;;  %1226 = vmatprep.subr.mxu1 %v1130_v1 }
 0x3d8   :  { %1328 = vmatmul.mubr.msk.f32.vlgmr.msra.gmra.mrb[4].mxu0 %vm847_vm7, %v997_v9  ;;  %1227 = vmatpush1.msra.mxu1 %v1129_v15 }
 0x3d9   :  { %1329 = vmatmul.mubr.msk.f32.vlgmr.msra.gmra.mrb[4].mxu1 %vm847_vm7, %v997_v9 }
 0x3e3   :  { %v1134_v39 = vpop.permute.xlu1 %1133 }
 0x4ab   :  { %v1205_v0 = vpop.f32.mrb[4].mxu0 }
 0x4ac   :  { %v1276_v61 = vpop.f32.mrb[4].mxu1  ;;  %v1206_v6 = vadd.f32 %v1205_v0, %v1134_v39  ;;  %v1207_v46 = vpop.f32.mrb[5].mxu0 }
 0x4ad   :  { %v1277_v38 = vadd.f32 %v1276_v61, %v1134_v39  ;;  %v1208_v41 = vadd.f32 %v1207_v46, %v1134_v39  ;;  %v1278_v13 = vpop.f32.mrb[5].mxu1 }
 0x4ae   :  { %v1279_v7 = vadd.f32 %v1278_v13, %v1134_v39 }
 0x4af   :  { %v1285_v50 = vcombine.low %v1206_v6, %v1208_v41 }
 0x4b0   :  { %v1286_v33 = vcombine.low %v1277_v38, %v1279_v7 }
 0x4b1   :  { %v1293_v42 = vrot.slane %v1285_v50, %v1574_v29 }
 0x4b2   :  { %v1300_v54 = vrot.slane %v1286_v33, %v1574_v29 }
 0x4b4   :  { %v1301_v23 = vcombine.low %v1293_v42, %v1300_v54 }
 0x4b6   :  { %v1308_v17 = vrot.slane %v1301_v23, %v1574_v29 }
 0x4b8   :  { %v1310_v25 = vadd.f32 %v1422_v24, %v1308_v17 }
 0x4ba   :  { %1315 = vst.msk [vmem:[%s2364_s8] sm:$0xf] %vm1313_vm0, %v1310_v25 }

</bundles_post_ra>
